<compile_context>
chip_gen: v7x
topology: tpu7x:2x2x1
jax: 0.10.0
libtpu: 0.0.40
codegen_flags: <defaults>
</compile_context>

<pallas_src>
import functools

import jax
import jax.numpy as jnp
from jax.experimental import pallas as pl
from jax.experimental.pallas import tpu as pltpu


# ---------------------------------------------------------------------------
# Fused kernel: 1x1 conv -> BN -> LeakyReLU -> 3x3 conv -> BN -> LeakyReLU -> cat
# ---------------------------------------------------------------------------
def _proj_cat_fused_kernel(x_ref, w1_ref, b1_ref, w2_ref, b2_ref, mask_ref, y_ref,
                           o_ref, stack_ref, *, H, W, slope):
    HW = H * W
    Cmid = w1_ref.shape[0]
    Cout = w2_ref.shape[0]

    def lane_shift(v, off):
        # result[:, p] = v[:, (p + off) mod HW]; wrapped lanes are zeroed by masks.
        return pltpu.roll(v, (-off) % HW, axis=1)

    # ---- proj1: 1x1 conv (+ folded BN) + LeakyReLU, channels-major ------------
    x = x_ref[0]                                                   # (Cin, HW)
    h = jnp.dot(w1_ref[...], x, preferred_element_type=jnp.float32)
    h = h + b1_ref[...]                                            # (Cmid, 1) lane bcast
    h = jnp.where(h >= 0, h, slope * h)                            # (Cmid, HW)

    masks = mask_ref[...]                                          # (4, HW) f32
    m_left, m_right = masks[0:1, :], masks[1:2, :]                 # col != 0 / col != W-1
    m_top, m_bot = masks[2:3, :], masks[3:4, :]                    # row != 0 / row != H-1

    # ---- build the K-stacked im2col slab (9*Cmid, HW), tap t = kh*3 + kw -------
    base = 3 * Cmid
    # kw variants of h (dw = -1, 0, +1) written once as the kh = 1 (dh = 0) block;
    # stores land at Cmid-aligned sublane offsets (no misaligned slab slices).
    stack_ref[base + 0 * Cmid:base + 1 * Cmid, :] = lane_shift(h, -1) * m_left
    stack_ref[base + 1 * Cmid:base + 2 * Cmid, :] = h
    stack_ref[base + 2 * Cmid:base + 3 * Cmid, :] = lane_shift(h, 1) * m_right
    trip = stack_ref[base:2 * base, :]                             # (3*Cmid, HW)
    # dh = -1 (kh = 0) and dh = +1 (kh = 2) are whole-row lane shifts of the triple.
    stack_ref[0:base, :] = lane_shift(trip, -W) * m_top
    stack_ref[2 * base:3 * base, :] = lane_shift(trip, W) * m_bot

    # ---- proj2: 3x3 conv as ONE K = 9*Cmid matmul (+ folded BN) + LeakyReLU ----
    out = jnp.dot(w2_ref[...], stack_ref[...], preferred_element_type=jnp.float32)
    out = out + b2_ref[...]                                        # (Cout, 1) lane bcast
    out = jnp.where(out >= 0, out, slope * out)

    # ---- fused torch.cat([proj2(proj1(x)), y], dim=1) --------------------------
    o_ref[0, 0:Cout, :] = out.astype(o_ref.dtype)
    o_ref[0, Cout:, :] = y_ref[0]


def proj_cat_forward(x_nchw, y_nchw, params, *, slope=0.1):
    """Pallas implementation of proj_cat.forward (inference).  Returns NCHW."""
    Nb, Cin, H, W = x_nchw.shape
    HW = H * W
    w1, b1 = params["w1"], params["b1"]                 # (Cmid, Cin), (Cmid, 1)
    w2, b2 = params["w2"], params["b2"]                 # (Cout, 9*Cmid), (Cout, 1)
    Cmid, Cout = w1.shape[0], w2.shape[0]
    y_ch = y_nchw.shape[1]

    # NCHW with HW flattened is already channels-major: no relayout passes.
    x = x_nchw.reshape(Nb, Cin, HW)
    y = y_nchw.reshape(Nb, y_ch, HW)

    # Edge-validity masks for the lane-shifted 3x3 taps (tiny, lane-dense, resident).
    pos = jnp.arange(HW, dtype=jnp.int32)
    row, col = pos // W, pos % W
    masks = jnp.stack([col != 0, col != W - 1, row != 0, row != H - 1]
                      ).astype(jnp.float32)             # (4, HW)

    flops = 2 * Nb * HW * (Cin * Cmid + 9 * Cmid * Cout)
    bytes_accessed = 4 * (Nb * HW * (Cin + Cout + 2 * y_ch)
                          + Cmid * Cin + Cmid + 9 * Cmid * Cout + Cout + 4 * HW)

    # Per-step VMEM: double-buffered x/y/out blocks + resident weights/masks +
    # the (9*Cmid, HW) tap slab + live intermediates; clamped so it leaves
    # headroom on v7x (64 MiB physical VMEM) as well as v5e/v6e.
    vmem_need = 4 * (2 * HW * (Cin + Cout + 2 * y_ch)
                     + 2 * (Cmid * Cin + Cmid + 9 * Cmid * Cout + Cout + 4 * HW)
                     + 9 * Cmid * HW + 6 * Cmid * HW + 2 * Cout * HW)
    vmem_limit = int(min(max(2 * vmem_need, 16 * 1024 * 1024), 32 * 1024 * 1024))

    out_flat = pl.pallas_call(
        functools.partial(_proj_cat_fused_kernel, H=H, W=W, slope=slope),
        out_shape=jax.ShapeDtypeStruct((Nb, Cout + y_ch, HW), jnp.float32),
        grid=(Nb,),
        in_specs=[
            pl.BlockSpec((1, Cin, HW), lambda n: (n, 0, 0)),       # x: one image / step
            pl.BlockSpec((Cmid, Cin), lambda n: (0, 0)),           # w1 (resident)
            pl.BlockSpec((Cmid, 1), lambda n: (0, 0)),             # folded BN bias 1
            pl.BlockSpec((Cout, 9 * Cmid), lambda n: (0, 0)),      # w2, tap-stacked
            pl.BlockSpec((Cout, 1), lambda n: (0, 0)),             # folded BN bias 2
            pl.BlockSpec((4, HW), lambda n: (0, 0)),               # edge masks
            pl.BlockSpec((1, y_ch, HW), lambda n: (n, 0, 0)),      # y: fused concat
        ],
        out_specs=pl.BlockSpec((1, Cout + y_ch, HW), lambda n: (n, 0, 0)),
        scratch_shapes=[pltpu.VMEM((9 * Cmid, HW), jnp.float32)],
        compiler_params=pltpu.CompilerParams(
            dimension_semantics=("parallel",),       # batch images are independent
            vmem_limit_bytes=vmem_limit),
        cost_estimate=pl.CostEstimate(flops=flops, transcendentals=0,
                                      bytes_accessed=bytes_accessed),
    )(x, w1, b1, w2, b2, masks, y)

    # TODO(synk): at production H*W add a spatial row-block grid axis (1-row halo)
    # and bf16 storage of x/h/w on v6e/v7x (f32 activation math kept on v5e);
    # grid-invariant operands could also be single-buffered via pl.Buffered(1).
    return out_flat.reshape(Nb, Cout + y_ch, H, W)


# ---------------------------------------------------------------------------
# Deterministic parameter construction (synthetic init, BN folded) + reference
# ---------------------------------------------------------------------------
def fold_bn(w, gamma, beta, mean, var, eps=1e-5):
    """Fold eval-mode BatchNorm into a (Cout, K) conv weight and (Cout, 1) bias."""
    scale = gamma / jnp.sqrt(var + eps)
    return w * scale[:, None], (beta - mean * scale)[:, None]


def make_params(key, input_1, do):
    cmid, cout = do // 2, do
    k = jax.random.split(key, 8)

    # proj1: Conv2d(input_1, cmid, 1, bias=False) weight (cmid, input_1, 1, 1) -> (cmid, Cin)
    w1 = 0.1 * jax.random.normal(k[0], (cmid, input_1), jnp.float32)
    g1 = 1.0 + 0.05 * jax.random.normal(k[1], (cmid,), jnp.float32)
    be1 = 0.05 * jax.random.normal(k[2], (cmid,), jnp.float32)
    mu1 = 0.05 * jax.random.normal(k[3], (cmid,), jnp.float32)
    var1 = jnp.abs(1.0 + 0.05 * jax.random.normal(k[4], (cmid,), jnp.float32))
    w1f, b1f = fold_bn(w1, g1, be1, mu1, var1)

    # proj2: Conv2d(cmid, cout, 3, pad=1, bias=False) weight (cout, cmid, 3, 3),
    # reordered to (cout, (kh*3 + kw)*cmid + c) to match the kernel's tap stacking.
    w2_t = 0.05 * jax.random.normal(k[5], (cout, cmid, 3, 3), jnp.float32)
    w2 = jnp.transpose(w2_t, (0, 2, 3, 1)).reshape(cout, 9 * cmid)
    g2 = 1.0 + 0.05 * jax.random.normal(k[6], (cout,), jnp.float32)
    be2 = 0.05 * jax.random.normal(k[7], (cout,), jnp.float32)
    w2f, b2f = fold_bn(w2, g2, be2, jnp.zeros((cout,), jnp.float32),
                       jnp.ones((cout,), jnp.float32))

    return {"w1": w1f, "b1": b1f, "w2": w2f, "b2": b2f}


def proj_cat_reference(x, y, params, *, slope=0.1):
    """Pure-JAX reference (same folded params) used only for a numerical check."""
    Nb, Cin, H, W = x.shape
    w1, b1, w2, b2 = params["w1"], params["b1"], params["w2"], params["b2"]
    Cmid, Cout = w1.shape[0], w2.shape[0]
    h = jnp.einsum("mc,nchw->nmhw", w1, x, precision=jax.lax.Precision.HIGHEST)
    h = h + b1.reshape(1, Cmid, 1, 1)
    h = jnp.where(h >= 0, h, slope * h)
    hpad = jnp.pad(h, ((0, 0), (0, 0), (1, 1), (1, 1)))
    col = jnp.concatenate([hpad[:, :, kh:kh + H, kw:kw + W]
                           for kh in range(3) for kw in range(3)], axis=1)
    o = jnp.einsum("ok,nkhw->nohw", w2, col, precision=jax.lax.Precision.HIGHEST)
    o = o + b2.reshape(1, Cout, 1, 1)
    o = jnp.where(o >= 0, o, slope * o)
    return jnp.concatenate([o, y], axis=1)


if __name__ == "__main__":
    key = jax.random.PRNGKey(0)
    kx, ky, kp = jax.random.split(key, 3)

    batch, input_1, spatial, do, y_ch = 2, 4, 16, 32, 8
    x = jax.random.normal(kx, (batch, input_1, spatial, spatial), jnp.float32)
    y = jax.random.normal(ky, (batch, y_ch, spatial, spatial), jnp.float32)
    params = make_params(kp, input_1, do)

    out = jax.jit(proj_cat_forward)(x, y, params)
    out = jax.block_until_ready(out)
    assert out.shape == (batch, do + y_ch, spatial, spatial), out.shape

    ref = proj_cat_reference(x, y, params)
    err = float(jnp.max(jnp.abs(out - ref)))
    assert err < 5e-3, f"max abs err {err}"
    print("KERNEL_OK")
</pallas_src>

<mosaic_0001>
module attributes {stable_mosaic.version = 11 : i64} {
  func.func @_proj_cat_fused_kernel(%arg0: i32, %arg1: memref<1x4x256xf32, #tpu.memory_space<vmem>>, %arg2: memref<16x4xf32, #tpu.memory_space<vmem>>, %arg3: memref<16x1xf32, #tpu.memory_space<vmem>>, %arg4: memref<32x144xf32, #tpu.memory_space<vmem>>, %arg5: memref<32x1xf32, #tpu.memory_space<vmem>>, %arg6: memref<4x256xf32, #tpu.memory_space<vmem>>, %arg7: memref<1x8x256xf32, #tpu.memory_space<vmem>>, %arg8: memref<1x40x256xf32, #tpu.memory_space<vmem>>, %arg9: memref<144x256xf32, #tpu.memory_space<vmem>>) attributes {dimension_semantics = [#tpu.dimension_semantics<parallel>], iteration_bounds = array<i64: 2>, scalar_prefetch = 0 : i64, scratch_operands = 1 : i64, tpu.core_type = #tpu.core_type<tc>, window_params = [{transform_indices = @transform_0, window_bounds = array<i64: 1, 4, 256>}, {pipeline_mode = #tpu.pipeline_mode<synchronous>, transform_indices = @transform_1, window_bounds = array<i64: 16, 4>}, {pipeline_mode = #tpu.pipeline_mode<synchronous>, transform_indices = @transform_2, window_bounds = array<i64: 16, 1>}, {pipeline_mode = #tpu.pipeline_mode<synchronous>, transform_indices = @transform_3, window_bounds = array<i64: 32, 144>}, {pipeline_mode = #tpu.pipeline_mode<synchronous>, transform_indices = @transform_4, window_bounds = array<i64: 32, 1>}, {pipeline_mode = #tpu.pipeline_mode<synchronous>, transform_indices = @transform_5, window_bounds = array<i64: 4, 256>}, {transform_indices = @transform_6, window_bounds = array<i64: 1, 8, 256>}, {transform_indices = @transform_7, window_bounds = array<i64: 1, 40, 256>}]} {
    %c0 = arith.constant 0 : index
    %c0_0 = arith.constant 0 : index
    %c0_1 = arith.constant 0 : index
    %0 = vector.load %arg1[%c0, %c0_0, %c0_1] : memref<1x4x256xf32, #tpu.memory_space<vmem>>, vector<1x4x256xf32>
    %1 = vector.shape_cast %0 : vector<1x4x256xf32> to vector<4x256xf32>
    %c0_2 = arith.constant 0 : index
    %c0_3 = arith.constant 0 : index
    %2 = vector.load %arg2[%c0_2, %c0_3] : memref<16x4xf32, #tpu.memory_space<vmem>>, vector<16x4xf32>
    %cst = arith.constant dense<0.000000e+00> : vector<16x256xf32>
    %3 = tpu.matmul %2, %1, %cst {dimension_numbers = #tpu.dot_dimension_numbers<[1], [0], [0], [1], [0, 0, 1, 1], [], []>} : vector<16x4xf32>, vector<4x256xf32>, vector<16x256xf32> -> vector<16x256xf32>
    %c0_4 = arith.constant 0 : index
    %c0_5 = arith.constant 0 : index
    %4 = vector.load %arg3[%c0_4, %c0_5] : memref<16x1xf32, #tpu.memory_space<vmem>>, vector<16x1xf32>
    %5 = vector.broadcast %4 : vector<16x1xf32> to vector<16x256xf32>
    %6 = arith.addf %3, %5 : vector<16x256xf32>
    %cst_6 = arith.constant 0.000000e+00 : f32
    %7 = vector.broadcast %cst_6 : f32 to vector<16x256xf32>
    %8 = arith.cmpf oge, %6, %7 : vector<16x256xf32>
    %cst_7 = arith.constant 1.000000e-01 : f32
    %9 = vector.broadcast %cst_7 : f32 to vector<16x256xf32>
    %10 = arith.mulf %9, %6 : vector<16x256xf32>
    %11 = arith.select %8, %6, %10 : vector<16x256xi1>, vector<16x256xf32>
    %c0_8 = arith.constant 0 : index
    %c0_9 = arith.constant 0 : index
    %12 = vector.load %arg6[%c0_8, %c0_9] : memref<4x256xf32, #tpu.memory_space<vmem>>, vector<4x256xf32>
    %13 = vector.extract_strided_slice %12 {offsets = [0, 0], sizes = [1, 256], strides = [1, 1]} : vector<4x256xf32> to vector<1x256xf32>
    %14 = vector.extract_strided_slice %12 {offsets = [1, 0], sizes = [1, 256], strides = [1, 1]} : vector<4x256xf32> to vector<1x256xf32>
    %15 = vector.extract_strided_slice %12 {offsets = [2, 0], sizes = [1, 256], strides = [1, 1]} : vector<4x256xf32> to vector<1x256xf32>
    %16 = vector.extract_strided_slice %12 {offsets = [3, 0], sizes = [1, 256], strides = [1, 1]} : vector<4x256xf32> to vector<1x256xf32>
    %c1_i32 = arith.constant 1 : i32
    %17 = tpu.dynamic_rotate %11 by %c1_i32 dim 1 : vector<16x256xf32>, i32 -> vector<16x256xf32>
    %18 = vector.broadcast %13 : vector<1x256xf32> to vector<16x256xf32>
    %19 = arith.mulf %17, %18 : vector<16x256xf32>
    %c48 = arith.constant 48 : index
    %c0_10 = arith.constant 0 : index
    %20 = vector.load %arg9[%c48, %c0_10] : memref<144x256xf32, #tpu.memory_space<vmem>>, vector<16x256xf32>
    tpu.vector_store %arg9[%c48, %c0_10], %19 {strides = array<i32>} : memref<144x256xf32, #tpu.memory_space<vmem>>, vector<16x256xf32>,
    %c64 = arith.constant 64 : index
    %c0_11 = arith.constant 0 : index
    %21 = vector.load %arg9[%c64, %c0_11] : memref<144x256xf32, #tpu.memory_space<vmem>>, vector<16x256xf32>
    tpu.vector_store %arg9[%c64, %c0_11], %11 {strides = array<i32>} : memref<144x256xf32, #tpu.memory_space<vmem>>, vector<16x256xf32>,
    %c255_i32 = arith.constant 255 : i32
    %22 = tpu.dynamic_rotate %11 by %c255_i32 dim 1 : vector<16x256xf32>, i32 -> vector<16x256xf32>
    %23 = vector.broadcast %14 : vector<1x256xf32> to vector<16x256xf32>
    %24 = arith.mulf %22, %23 : vector<16x256xf32>
    %c80 = arith.constant 80 : index
    %c0_12 = arith.constant 0 : index
    %25 = vector.load %arg9[%c80, %c0_12] : memref<144x256xf32, #tpu.memory_space<vmem>>, vector<16x256xf32>
    tpu.vector_store %arg9[%c80, %c0_12], %24 {strides = array<i32>} : memref<144x256xf32, #tpu.memory_space<vmem>>, vector<16x256xf32>,
    %c48_13 = arith.constant 48 : index
    %c0_14 = arith.constant 0 : index
    %26 = vector.load %arg9[%c48_13, %c0_14] : memref<144x256xf32, #tpu.memory_space<vmem>>, vector<48x256xf32>
    %c16_i32 = arith.constant 16 : i32
    %27 = tpu.dynamic_rotate %26 by %c16_i32 dim 1 : vector<48x256xf32>, i32 -> vector<48x256xf32>
    %28 = vector.broadcast %15 : vector<1x256xf32> to vector<48x256xf32>
    %29 = arith.mulf %27, %28 : vector<48x256xf32>
    %c0_15 = arith.constant 0 : index
    %c0_16 = arith.constant 0 : index
    %30 = vector.load %arg9[%c0_15, %c0_16] : memref<144x256xf32, #tpu.memory_space<vmem>>, vector<48x256xf32>
    tpu.vector_store %arg9[%c0_15, %c0_16], %29 {strides = array<i32>} : memref<144x256xf32, #tpu.memory_space<vmem>>, vector<48x256xf32>,
    %c240_i32 = arith.constant 240 : i32
    %31 = tpu.dynamic_rotate %26 by %c240_i32 dim 1 : vector<48x256xf32>, i32 -> vector<48x256xf32>
    %32 = vector.broadcast %16 : vector<1x256xf32> to vector<48x256xf32>
    %33 = arith.mulf %31, %32 : vector<48x256xf32>
    %c96 = arith.constant 96 : index
    %c0_17 = arith.constant 0 : index
    %34 = vector.load %arg9[%c96, %c0_17] : memref<144x256xf32, #tpu.memory_space<vmem>>, vector<48x256xf32>
    tpu.vector_store %arg9[%c96, %c0_17], %33 {strides = array<i32>} : memref<144x256xf32, #tpu.memory_space<vmem>>, vector<48x256xf32>,
    %c0_18 = arith.constant 0 : index
    %c0_19 = arith.constant 0 : index
    %35 = vector.load %arg4[%c0_18, %c0_19] : memref<32x144xf32, #tpu.memory_space<vmem>>, vector<32x144xf32>
    %c0_20 = arith.constant 0 : index
    %c0_21 = arith.constant 0 : index
    %36 = vector.load %arg9[%c0_20, %c0_21] : memref<144x256xf32, #tpu.memory_space<vmem>>, vector<144x256xf32>
    %cst_22 = arith.constant dense<0.000000e+00> : vector<32x256xf32>
    %37 = tpu.matmul %35, %36, %cst_22 {dimension_numbers = #tpu.dot_dimension_numbers<[1], [0], [0], [1], [0, 0, 1, 1], [], []>} : vector<32x144xf32>, vector<144x256xf32>, vector<32x256xf32> -> vector<32x256xf32>
    %c0_23 = arith.constant 0 : index
    %c0_24 = arith.constant 0 : index
    %38 = vector.load %arg5[%c0_23, %c0_24] : memref<32x1xf32, #tpu.memory_space<vmem>>, vector<32x1xf32>
    %39 = vector.broadcast %38 : vector<32x1xf32> to vector<32x256xf32>
    %40 = arith.addf %37, %39 : vector<32x256xf32>
    %cst_25 = arith.constant 0.000000e+00 : f32
    %41 = vector.broadcast %cst_25 : f32 to vector<32x256xf32>
    %42 = arith.cmpf oge, %40, %41 : vector<32x256xf32>
    %cst_26 = arith.constant 1.000000e-01 : f32
    %43 = vector.broadcast %cst_26 : f32 to vector<32x256xf32>
    %44 = arith.mulf %43, %40 : vector<32x256xf32>
    %45 = arith.select %42, %40, %44 : vector<32x256xi1>, vector<32x256xf32>
    %c0_27 = arith.constant 0 : index
    %c0_28 = arith.constant 0 : index
    %c0_29 = arith.constant 0 : index
    %46 = vector.load %arg8[%c0_27, %c0_28, %c0_29] : memref<1x40x256xf32, #tpu.memory_space<vmem>>, vector<1x32x256xf32>
    %47 = vector.shape_cast %46 : vector<1x32x256xf32> to vector<32x256xf32>
    %48 = vector.shape_cast %45 : vector<32x256xf32> to vector<1x32x256xf32>
    tpu.vector_store %arg8[%c0_27, %c0_28, %c0_29], %48 {strides = array<i32>} : memref<1x40x256xf32, #tpu.memory_space<vmem>>, vector<1x32x256xf32>,
    %c0_30 = arith.constant 0 : index
    %c0_31 = arith.constant 0 : index
    %c0_32 = arith.constant 0 : index
    %49 = vector.load %arg7[%c0_30, %c0_31, %c0_32] : memref<1x8x256xf32, #tpu.memory_space<vmem>>, vector<1x8x256xf32>
    %50 = vector.shape_cast %49 : vector<1x8x256xf32> to vector<8x256xf32>
    %c0_33 = arith.constant 0 : index
    %c32 = arith.constant 32 : index
    %c0_34 = arith.constant 0 : index
    %51 = vector.load %arg8[%c0_33, %c32, %c0_34] : memref<1x40x256xf32, #tpu.memory_space<vmem>>, vector<1x8x256xf32>
    %52 = vector.shape_cast %51 : vector<1x8x256xf32> to vector<8x256xf32>
    %53 = vector.shape_cast %50 : vector<8x256xf32> to vector<1x8x256xf32>
    tpu.vector_store %arg8[%c0_33, %c32, %c0_34], %53 {strides = array<i32>} : memref<1x40x256xf32, #tpu.memory_space<vmem>>, vector<1x8x256xf32>,
    return
  }
  func.func @transform_0(%arg0: i32) -> (i32, i32, i32) {
    %c0_i32 = arith.constant 0 : i32
    %c0_i32_0 = arith.constant 0 : i32
    %c0_i32_1 = arith.constant 0 : i32
    return %arg0, %c0_i32, %c0_i32_0 : i32, i32, i32
  }
  func.func @transform_1(%arg0: i32) -> (i32, i32) {
    %c0_i32 = arith.constant 0 : i32
    %c0_i32_0 = arith.constant 0 : i32
    %c0_i32_1 = arith.constant 0 : i32
    return %c0_i32, %c0_i32_0 : i32, i32
  }
  func.func @transform_2(%arg0: i32) -> (i32, i32) {
    %c0_i32 = arith.constant 0 : i32
    %c0_i32_0 = arith.constant 0 : i32
    %c0_i32_1 = arith.constant 0 : i32
    return %c0_i32, %c0_i32_0 : i32, i32
  }
  func.func @transform_3(%arg0: i32) -> (i32, i32) {
    %c0_i32 = arith.constant 0 : i32
    %c0_i32_0 = arith.constant 0 : i32
    %c0_i32_1 = arith.constant 0 : i32
    return %c0_i32, %c0_i32_0 : i32, i32
  }
  func.func @transform_4(%arg0: i32) -> (i32, i32) {
    %c0_i32 = arith.constant 0 : i32
    %c0_i32_0 = arith.constant 0 : i32
    %c0_i32_1 = arith.constant 0 : i32
    return %c0_i32, %c0_i32_0 : i32, i32
  }
  func.func @transform_5(%arg0: i32) -> (i32, i32) {
    %c0_i32 = arith.constant 0 : i32
    %c0_i32_0 = arith.constant 0 : i32
    %c0_i32_1 = arith.constant 0 : i32
    return %c0_i32, %c0_i32_0 : i32, i32
  }
  func.func @transform_6(%arg0: i32) -> (i32, i32, i32) {
    %c0_i32 = arith.constant 0 : i32
    %c0_i32_0 = arith.constant 0 : i32
    %c0_i32_1 = arith.constant 0 : i32
    return %arg0, %c0_i32, %c0_i32_0 : i32, i32, i32
  }
  func.func @transform_7(%arg0: i32) -> (i32, i32, i32) {
    %c0_i32 = arith.constant 0 : i32
    %c0_i32_0 = arith.constant 0 : i32
    %c0_i32_1 = arith.constant 0 : i32
    return %arg0, %c0_i32, %c0_i32_0 : i32, i32, i32
  }
}

</mosaic_0001>

<bundles_post_ra>
// kernel: proj_cat_forward.1
= control target key start
LH: loop header
LB: loop body
LE: loop exit
PB: predicated region body
PF: predicated region fallthrough
CT: control target
= control target key end

     0   :  { %s1094_s24 = smov 0   ;;  %s1331_s0 = inlined_call_operand.vmem [shape: f32[2,4,256], index: 0, kind: input, shape index: {}]   ;;  %s1332_s1 = inlined_call_operand.vmem [shape: f32[16,4], index: 1, kind: input, shape index: {}]   ;;  %s1333_s2 = inlined_call_operand.vmem [shape: f32[16,1], index: 2, kind: input, shape index: {}]   ;;  %s1334_s3 = inlined_call_operand.vmem [shape: f32[32,144], index: 3, kind: input, shape index: {}]   ;;  %s1335_s4 = inlined_call_operand.vmem [shape: f32[32,1], index: 4, kind: input, shape index: {}]   ;;  %s1336_s5 = inlined_call_operand.vmem [shape: f32[4,256], index: 5, kind: input, shape index: {}]   ;;  %s1337_s6 = inlined_call_operand.vmem [shape: f32[2,8,256], index: 6, kind: input, shape index: {}]   ;;  %s1338_s7 = inlined_call_operand.vmem [shape: f32[2,40,256], index: 7, kind: output, shape index: {}]  }
   0x1 LB: > { %s946_s25 = sadd.s32 4294967295, %s1046_s24   ;;  %p950_p0 = scmp.ge.s32.totalorder %s1046_s24, 1  ;;  %s1046_s24 = sphi %s1094_s24, %s17_s24  }
   0x2   : > { %p247_p1 = scmp.lt.s32.totalorder %s1046_s24, 3 }
   0x4   : > { %p248_p2 = pnand %p950_p0, %p247_p1 }
   0x5   : > { %p284_p3 = scmp.lt.s32.totalorder (!%p248_p2), %s946_s25, 1  ;;  %v1048_v0 = vmov (!%p248_p2), 0.0   ;;  %v302_v1 = vld [vmem:[%s1333_s2] sm:$0xff] (!%p248_p2)  ;;  %v1049_v2 = vmov (!%p248_p2), 0   ;;  %v303_v3 = vld [vmem:[%s1333_s2 + $0x8] sm:$0xff] (!%p248_p2)  ;;  %vm323_vm0 = vcmask (!%p248_p2), 1043456   ;;  %v426_v28 = vlaneseq (!%p248_p2) }
   0x6   : > { %251 = sbr.rel (%p248_p2) target bundleno = 751 (0x2ef), region = 48  ;;  %392 = vmatprep.mubr.f32.mxu0 (!%p248_p2), %v1048_v0  ;;  %1037 = vset.pattern.permute.xlu0 (!%p248_p2), %v1049_v2  ;;  %v300_v8 = vld [vmem:[%s1332_s1] sm:$0xff] (!%p248_p2)  ;;  %vm316_vm1 = vcmask (!%p248_p2), 31744   ;;  %v301_v9 = vld [vmem:[%s1332_s1 + $0x8] sm:$0xff] (!%p248_p2)  ;;  %s1050_s23 = smov (!%p248_p2), 1   ;;  %vm741_vm8 = vcmask (!%p248_p2), 130048  }
   0x7   : > { %1038 = vset.pattern.permute.xlu1 (!%p248_p2), %v1049_v2  ;;  %306 = vperm.xlu0 (!%p248_p2), %1037, %v302_v1   ;;  %s1052_s26 = smov (!%p248_p2), 16   ;;  %v1151_v29 = vshrl.u32 (!%p248_p2), %v426_v28, 7  ;;  %v1157_v31 = vld [vmem:[%s1336_s5] sm:$0xff] (!%p248_p2)  ;;  %v1159_v32 = vand.u32 (!%p248_p2), 127, %v426_v28 }
   0x9   : > { %v436_v30 = vsub.s32 (!%p248_p2), 0, %v1151_v29  ;;  %v440_v34 = vsub.s32 (!%p248_p2), 4, %v1151_v29  ;;  %vm428_vm6 = vcmp.lt.s32.totalorder (!%p248_p2), %v1159_v32, 1  ;;  %v479_v37 = vsub.s32 (!%p248_p2), 1, %v1151_v29 }
   0xa   : > { %v483_v44 = vsub.s32 (!%p248_p2), 5, %v1151_v29  ;;  %vm472_vm7 = vcmp.lt.s32.totalorder (!%p248_p2), %v1159_v32, 127  ;;  %vm539_vm9 = vcmp.lt.s32.totalorder (!%p248_p2), %v1159_v32, 16  ;;  %vm618_vm10 = vcmp.lt.s32.totalorder (!%p248_p2), %v1159_v32, 112  ;;  %v675_v32 = vld [vmem:[%s1334_s3 + $0x10] sm:$0xff] (!%p248_p2) }
   0xb   : > { %311 = vperm.xlu0 (!%p248_p2), %1037, %v303_v3   ;;  %v437_v33 = vrot.slane (!%p248_p2), %v1157_v31, %v436_v30  ;;  %v441_v35 = vrot.slane (!%p248_p2), %v1157_v31, %v440_v34  ;;  %v480_v43 = vrot.slane (!%p248_p2), %v1157_v31, %v479_v37 }
   0xc   : > { %v484_v49 = vrot.slane (!%p248_p2), %v1157_v31, %v483_v44 }
   0xd   : > { %s1340_s25 = smov (!%p284_p3, %s946_s25), 1  ;;  %v447_v36 = vrot.slane %v437_v33, %v436_v30  ;;  %v451_v41 = vrot.slane %v441_v35, %v436_v30  ;;  %v490_v50 = vrot.slane %v480_v43, %v479_v37 }
   0xe   : > { %s966_s28 = sshll.u32 %s1340_s25, 3  ;;  %s967_s29 = sshll.u32 %s1340_s25, 4  ;;  %v494_v58 = vrot.slane %v484_v49, %v479_v37 }
   0xf   : > { %s288_s11 = scalar_lea.vmem %s1331_s0, %s966_s28  ;;  %s293_s14 = scalar_lea.vmem %s1337_s6, %s967_s29 }
  0x10   : > { %s1022_s15 = smul.u32 80, %s1340_s25  ;;  %v299_v4 = vld [vmem:[%s288_s11] sm:$0xff]  ;;  %v876_v6 = vld [vmem:[%s293_s14 + $0x8] sm:$0xff]  ;;  %s1051_s25 = smov 127  }
  0x11   : > { %v875_v5 = vld [vmem:[%s293_s14] sm:$0xff]  ;;  %v315_v7 = vcombine.high %v299_v4, %v299_v4  ;;  %s1053_s29 = smov 112  }
  0x12   : > { %s1117_s18 = scalar_lea.vmem %s1338_s7, %s1022_s15 }
  0x13   : > { %956 = vmatprep.subr.msk.mxu0 %vm323_vm0, %v315_v7  ;;  %877 = vst [vmem:[%s1117_s18 + $0x40] sm:$0xff] %v875_v5  ;;  %878 = vst [vmem:[%s1117_s18 + $0x48] sm:$0xff] %v876_v6 }
  0x14   : > { %957 = vmatpush1.msk.msra.mxu0 %vm323_vm0, %v299_v4 }
  0x15   : > { %958 = vmatmul.mubr.msk.f32.vlgmr.msra.gmra.mrb[0].mxu0 %vm316_vm1, %v300_v8  ;;  %v674_v8 = vld [vmem:[%s1334_s3 + $0x8] sm:$0xff] }
  0x16   : > { %398 = vmatprep.mubr.f32.mxu0 %v1048_v0 }
  0x19   : > { %959 = vmatmul.mubr.msk.f32.gmra.mrb[2].mxu0 %vm316_vm1, %v301_v9  ;;  %v676_v9 = vld [vmem:[%s1334_s3 + $0x18] sm:$0xff] }
  0x1a   : > { %960 = vmatprep.mubr.msk.f32.mxu0 %vm741_vm8, %v674_v8  ;;  %961 = vmatprep.mubr.msk.f32.mxu1 %vm741_vm8, %v676_v9 }
  0x86   : > { %v307_v10 = vpop.permute.xlu0 %306 }
  0x8a   : > { %v312_v16 = vpop.permute.xlu0 %311 }
  0xe8   : > { %v394_v11 = vpop.f32.mrb[0].mxu0 }
  0xe9   : > { %v395_v12 = vadd.f32 %v394_v11, %v307_v10  ;;  %v396_v13 = vpop.f32.mrb[1].mxu0  ;;  %v719_v11 = vld [vmem:[%s1335_s4 + $0x10] sm:$0xff] }
  0xea   : > { %v397_v14 = vadd.f32 %v396_v13, %v307_v10  ;;  %v717_v10 = vld [vmem:[%s1335_s4] sm:$0xff]  ;;  %v720_v13 = vld [vmem:[%s1335_s4 + $0x18] sm:$0xff] }
  0xeb   : > { %vm405_vm2 = vcmp.ge.f32.partialorder %v395_v12, 0.0  ;;  %v409_v15 = vmul.f32 0.1, %v395_v12 }
  0xec   : > { %vm406_vm3 = vcmp.ge.f32.partialorder %v397_v14, 0.0  ;;  %v410_v17 = vmul.f32 0.1, %v397_v14  ;;  %v400_v18 = vpop.f32.mrb[2].mxu0 }
  0xed   : > { %v1127_v19 = vsel %vm405_vm2, %v395_v12, %v409_v15  ;;  %v401_v20 = vadd.f32 %v400_v18, %v312_v16  ;;  %v402_v21 = vpop.f32.mrb[3].mxu0  ;;  %v718_v12 = vld [vmem:[%s1335_s4 + $0x8] sm:$0xff]  ;;  %v558_v18 = vsub.s32 6, %v1151_v29 }
  0xee   : > { %v1129_v22 = vsel %vm406_vm3, %v397_v14, %v410_v17  ;;  %v403_v23 = vadd.f32 %v402_v21, %v312_v16  ;;  %418 = vrot.lane.b32.xlu1 %v1127_v19, %s1050_s23 }
  0xef   : > { %vm407_vm4 = vcmp.ge.f32.partialorder %v401_v20, 0.0  ;;  %v411_v24 = vmul.f32 0.1, %v401_v20  ;;  %422 = vrot.lane.b32.xlu0 %v1129_v22, %s1050_s23 }
  0xf0   : > { %v412_v26 = vmul.f32 0.1, %v403_v23  ;;  %vm408_vm5 = vcmp.ge.f32.partialorder %v403_v23, 0.0 }
  0xf1   : > { %v1133_v25 = vsel %vm407_vm4, %v401_v20, %v411_v24  ;;  %v554_v20 = vsub.s32 2, %v1151_v29  ;;  %v559_v24 = vrot.slane %v1157_v31, %v558_v18 }
  0xf2   : > { %420 = vrot.lane.b32.xlu1 %v1133_v25, %s1050_s23  ;;  %v1137_v27 = vsel %vm408_vm5, %v403_v23, %v412_v26 }
  0xf3   : > { %464 = vrot.lane.b32.xlu0 %v1127_v19, %s1051_s25  ;;  %v555_v26 = vrot.slane %v1157_v31, %v554_v20  ;;  %v569_v34 = vrot.slane %v559_v24, %v554_v20  ;;  %v986_v24 = vpack.c.bf16 %v1133_v25, %v1127_v19 }
  0xf5   : > { %v565_v37 = vrot.slane %v555_v26, %v554_v20 }
  0xf6   : > { %424 = vrot.lane.b32.xlu1 %v1137_v27, %s1050_s23 }
  0xf7   : > { %468 = vrot.lane.b32.xlu0 %v1129_v22, %s1051_s25 }
  0xfa   : > { %466 = vrot.lane.b32.xlu1 %v1133_v25, %s1051_s25 }
  0xfb   : > { %519 = vrot.lane.b32.xlu0 %v1127_v19, %s1052_s26 }
  0xfe   : > { %470 = vrot.lane.b32.xlu1 %v1137_v27, %s1051_s25 }
  0xff   : > { %531 = vrot.lane.b32.xlu0 %v1129_v22, %s1052_s26 }
 0x102   : > { %521 = vrot.lane.b32.xlu1 %v1133_v25, %s1052_s26 }
 0x106   : > { %533 = vrot.lane.b32.xlu1 %v1137_v27, %s1052_s26 }
 0x160   : > { %v419_v38 = vpop.permute.xlu1 %418 }
 0x161   : > { %v423_v39 = vpop.permute.xlu0 %422 }
 0x162   : > { %v431_v40 = vsel %vm428_vm6, %v423_v39, %v419_v38  ;;  %v429_v45 = vsel %vm428_vm6, %v419_v38, %v423_v39 }
 0x163   : > { %v452_v42 = vmul.f32 %v447_v36, %v431_v40  ;;  %v453_v48 = vmul.f32 %v451_v41, %v429_v45 }
 0x164   : > { %v421_v46 = vpop.permute.xlu1 %420 }
 0x165   : > { %v465_v47 = vpop.permute.xlu0 %464  ;;  %515 = vrot.lane.b32.xlu0 %v452_v42, %s1052_s26 }
 0x168   : > { %v425_v51 = vpop.permute.xlu1 %424 }
 0x169   : > { %v430_v52 = vsel %vm428_vm6, %v421_v46, %v425_v51  ;;  %v432_v53 = vsel %vm428_vm6, %v425_v51, %v421_v46  ;;  %v469_v54 = vpop.permute.xlu0 %468  ;;  %527 = vrot.lane.b32.xlu0 %v453_v48, %s1052_s26 }
 0x16a   : > { %v454_v55 = vmul.f32 %v447_v36, %v432_v53  ;;  %v455_v56 = vmul.f32 %v451_v41, %v430_v52  ;;  %v473_v57 = vsel %vm472_vm7, %v465_v47, %v469_v54  ;;  %v475_v61 = vsel %vm472_vm7, %v469_v54, %v465_v47 }
 0x16b   : > { %v495_v59 = vmul.f32 %v490_v50, %v473_v57  ;;  %v496_v0 = vmul.f32 %v494_v58, %v475_v61 }
 0x16c   : > { %v1182_v60 = vpack.c.bf16 %v454_v55, %v452_v42  ;;  %517 = vrot.lane.b32.xlu1 %v454_v55, %s1052_s26  ;;  %v467_v62 = vpop.permute.xlu1 %466  ;;  %v1187_v63 = vpack.c.bf16 %v455_v56, %v453_v48 }
 0x16d   : > { %523 = vrot.lane.b32.xlu0 %v495_v59, %s1052_s26  ;;  %v520_v14 = vpop.permute.xlu0 %519 }
 0x170   : > { %529 = vrot.lane.b32.xlu1 %v455_v56, %s1052_s26  ;;  %v471_v1 = vpop.permute.xlu1 %470 }
 0x171   : > { %v474_v2 = vsel %vm472_vm7, %v467_v62, %v471_v1  ;;  %v476_v3 = vsel %vm472_vm7, %v471_v1, %v467_v62  ;;  %535 = vrot.lane.b32.xlu0 %v496_v0, %s1052_s26  ;;  %v532_v15 = vpop.permute.xlu0 %531 }
 0x172   : > { %v497_v4 = vmul.f32 %v490_v50, %v474_v2  ;;  %v498_v5 = vmul.f32 %v494_v58, %v476_v3  ;;  %v542_v38 = vsel %vm539_vm9, %v520_v14, %v532_v15  ;;  %v548_v49 = vsel %vm539_vm9, %v532_v15, %v520_v14 }
 0x173   : > { %v575_v50 = vmul.f32 %v569_v34, %v542_v38  ;;  %v574_v57 = vmul.f32 %v565_v37, %v548_v49 }
 0x174   : > { %v1196_v6 = vpack.c.bf16 %v497_v4, %v495_v59  ;;  %525 = vrot.lane.b32.xlu1 %v497_v4, %s1052_s26  ;;  %v1199_v7 = vpack.c.bf16 %v498_v5, %v496_v0  ;;  %v522_v16 = vpop.permute.xlu1 %521 }
 0x175   : > { %598 = vrot.lane.b32.xlu0 %v1127_v19, %s1053_s29 }
 0x178   : > { %537 = vrot.lane.b32.xlu1 %v498_v5, %s1052_s26  ;;  %v534_v21 = vpop.permute.xlu1 %533 }
 0x179   : > { %594 = vrot.lane.b32.xlu0 %v452_v42, %s1053_s29  ;;  %v543_v33 = vsel %vm539_vm9, %v522_v16, %v534_v21  ;;  %v549_v40 = vsel %vm539_vm9, %v534_v21, %v522_v16 }
 0x17a   : > { %v577_v41 = vmul.f32 %v569_v34, %v543_v33  ;;  %v576_v54 = vmul.f32 %v565_v37, %v549_v40 }
 0x17c   : > { %600 = vrot.lane.b32.xlu1 %v1133_v25, %s1053_s29  ;;  %v974_v62 = vpack.c.bf16 %v576_v54, %v574_v57  ;;  %v678_v57 = vld [vmem:[%s1334_s3 + $0x28] sm:$0xff] }
 0x17d   : > { %606 = vrot.lane.b32.xlu0 %v453_v48, %s1053_s29 }
 0x180   : > { %612 = vrot.lane.b32.xlu1 %v1137_v27, %s1053_s29 }
 0x181   : > { %610 = vrot.lane.b32.xlu0 %v1129_v22, %s1053_s29 }
 0x184   : > { %596 = vrot.lane.b32.xlu1 %v454_v55, %s1053_s29 }
 0x185   : > { %602 = vrot.lane.b32.xlu0 %v495_v59, %s1053_s29 }
 0x188   : > { %608 = vrot.lane.b32.xlu1 %v455_v56, %s1053_s29  ;;  %v972_v56 = vpack.c.bf16 %v577_v41, %v575_v50 }
 0x189   : > { %614 = vrot.lane.b32.xlu0 %v496_v0, %s1053_s29 }
 0x18c   : > { %604 = vrot.lane.b32.xlu1 %v497_v4, %s1053_s29 }
 0x18d   : > { %723 = vperm.xlu0 %1037, %v717_v10  }
 0x190   : > { %616 = vrot.lane.b32.xlu1 %v498_v5, %s1053_s29 }
 0x191   : > { %733 = vperm.xlu0 %1037, %v719_v11   ;;  %v633_v11 = vsub.s32 3, %v1151_v29 }
 0x193   : > { %v634_v15 = vrot.slane %v1157_v31, %v633_v11 }
 0x194   : > { %728 = vperm.xlu1 %1038, %v718_v12   ;;  %v637_v12 = vsub.s32 7, %v1151_v29  ;;  %v984_v29 = vpack.c.bf16 %v1137_v27, %v1129_v22 }
 0x195   : > { %v644_v20 = vrot.slane %v634_v15, %v633_v11 }
 0x196   : > { %v638_v16 = vrot.slane %v1157_v31, %v637_v12 }
 0x198   : > { %738 = vperm.xlu1 %1038, %v720_v13   ;;  %v648_v21 = vrot.slane %v638_v16, %v633_v11 }
 0x1d7   : > { %v516_v17 = vpop.permute.xlu0 %515 }
 0x1db   : > { %v528_v23 = vpop.permute.xlu0 %527 }
 0x1dc   : > { %v540_v35 = vsel %vm539_vm9, %v516_v17, %v528_v23  ;;  %v546_v36 = vsel %vm539_vm9, %v528_v23, %v516_v17 }
 0x1dd   : > { %v570_v45 = vmul.f32 %v565_v37, %v546_v36  ;;  %v571_v46 = vmul.f32 %v569_v34, %v540_v35 }
 0x1de   : > { %v518_v28 = vpop.permute.xlu1 %517 }
 0x1df   : > { %v524_v30 = vpop.permute.xlu0 %523 }
 0x1e2   : > { %v530_v39 = vpop.permute.xlu1 %529 }
 0x1e3   : > { %v541_v42 = vsel %vm539_vm9, %v518_v28, %v530_v39  ;;  %v547_v43 = vsel %vm539_vm9, %v530_v39, %v518_v28  ;;  %v536_v44 = vpop.permute.xlu0 %535 }
 0x1e4   : > { %v572_v47 = vmul.f32 %v565_v37, %v547_v43  ;;  %v573_v48 = vmul.f32 %v569_v34, %v541_v42  ;;  %v544_v58 = vsel %vm539_vm9, %v524_v30, %v536_v44  ;;  %v550_v59 = vsel %vm539_vm9, %v536_v44, %v524_v30 }
 0x1e5   : > { %v578_v3 = vmul.f32 %v565_v37, %v550_v59  ;;  %v579_v4 = vmul.f32 %v569_v34, %v544_v58  ;;  %v677_v58 = vld [vmem:[%s1334_s3 + $0x20] sm:$0xff]  ;;  %v680_v59 = vld [vmem:[%s1334_s3 + $0x38] sm:$0xff] }
 0x1e6   : > { %v970_v51 = vpack.c.bf16 %v572_v47, %v570_v45  ;;  %v526_v52 = vpop.permute.xlu1 %525  ;;  %v968_v53 = vpack.c.bf16 %v573_v48, %v571_v46 }
 0x1e7   : > { %v1247_v55 = vpop.permute.xlu0 %598 }
 0x1e8   : > { %969 = vmatprep.subr.bf16.mxu0 %v968_v53  ;;  %1004 = vmatprep.subr.bf16.mxu1 %v968_v53 }
 0x1e9   : > { %971 = vmatpush1.bf16.msra.mxu0 %v970_v51  ;;  %1013 = vmatpush1.bf16.msra.mxu1 %v970_v51 }
 0x1ea   : > { %973 = vmatprep.subr.bf16.mxu0 %v972_v56  ;;  %1005 = vmatprep.subr.bf16.mxu1 %v972_v56  ;;  %v538_v61 = vpop.permute.xlu1 %537  ;;  %v673_v56 = vld [vmem:[%s1334_s3] sm:$0xff] }
 0x1eb   : > { %v545_v0 = vsel %vm539_vm9, %v526_v52, %v538_v61  ;;  %v551_v1 = vsel %vm539_vm9, %v538_v61, %v526_v52  ;;  %v595_v2 = vpop.permute.xlu0 %594  ;;  %v679_v61 = vld [vmem:[%s1334_s3 + $0x30] sm:$0xff] }
 0x1ec   : > { %v580_v5 = vmul.f32 %v565_v37, %v551_v1  ;;  %v581_v8 = vmul.f32 %v569_v34, %v545_v0 }
 0x1ed   : > { %975 = vmatpush1.bf16.msra.mxu0 %v974_v62  ;;  %1014 = vmatpush1.bf16.msra.mxu1 %v974_v62 }
 0x1ee   : > { %v978_v9 = vpack.c.bf16 %v580_v5, %v578_v3  ;;  %v601_v10 = vpop.permute.xlu1 %600  ;;  %v976_v13 = vpack.c.bf16 %v581_v8, %v579_v4 }
 0x1ef   : > { %v607_v14 = vpop.permute.xlu0 %606 }
 0x1f0   : > { %977 = vmatprep.subr.bf16.mxu0 %v976_v13  ;;  %1006 = vmatprep.subr.bf16.mxu1 %v976_v13  ;;  %v619_v23 = vsel %vm618_vm10, %v595_v2, %v607_v14 }
 0x1f1   : > { %979 = vmatpush1.bf16.msra.mxu0 %v978_v9  ;;  %1015 = vmatpush1.bf16.msra.mxu1 %v978_v9  ;;  %v649_v26 = vmul.f32 %v644_v20, %v619_v23 }
 0x1f2   : > { %981 = vmatprep.subr.bf16.mxu0 %v1187_v63  ;;  %1007 = vmatprep.subr.bf16.mxu1 %v1187_v63  ;;  %v613_v17 = vpop.permute.xlu1 %612  ;;  %v625_v63 = vsel %vm618_vm10, %v607_v14, %v595_v2 }
 0x1f3   : > { %v611_v18 = vpop.permute.xlu0 %610  ;;  %v628_v22 = vsel %vm618_vm10, %v613_v17, %v601_v10  ;;  %v650_v28 = vmul.f32 %v648_v21, %v625_v63  ;;  %v622_v19 = vsel %vm618_vm10, %v601_v10, %v613_v17 }
 0x1f4   : > { %v656_v25 = vmul.f32 %v648_v21, %v628_v22  ;;  %v621_v35 = vsel %vm618_vm10, %v1247_v55, %v611_v18  ;;  %v655_v42 = vmul.f32 %v644_v20, %v622_v19 }
 0x1f5   : > { %983 = vmatpush1.bf16.msra.mxu0 %v1182_v60  ;;  %1016 = vmatpush1.bf16.msra.mxu1 %v1182_v60  ;;  %v627_v60 = vsel %vm618_vm10, %v611_v18, %v1247_v55  ;;  %v653_v43 = vmul.f32 %v644_v20, %v621_v35 }
 0x1f6   : > { %985 = vmatprep.subr.bf16.mxu0 %v984_v29  ;;  %1008 = vmatprep.subr.bf16.mxu1 %v984_v29  ;;  %v597_v31 = vpop.permute.xlu1 %596  ;;  %v654_v36 = vmul.f32 %v648_v21, %v627_v60 }
 0x1f7   : > { %v603_v27 = vpop.permute.xlu0 %602 }
 0x1f8   : > { %v996_v44 = vpack.c.bf16 %v656_v25, %v654_v36 }
 0x1f9   : > { %987 = vmatpush1.bf16.msra.mxu0 %v986_v24  ;;  %1017 = vmatpush1.bf16.msra.mxu1 %v986_v24 }
 0x1fa   : > { %v609_v30 = vpop.permute.xlu1 %608  ;;  %989 = vmatprep.subr.bf16.mxu0 %v1199_v7  ;;  %1009 = vmatprep.subr.bf16.mxu1 %v1199_v7 }
 0x1fb   : > { %v620_v33 = vsel %vm618_vm10, %v597_v31, %v609_v30  ;;  %v626_v34 = vsel %vm618_vm10, %v609_v30, %v597_v31  ;;  %v615_v39 = vpop.permute.xlu0 %614 }
 0x1fc   : > { %v651_v37 = vmul.f32 %v644_v20, %v620_v33  ;;  %v652_v38 = vmul.f32 %v648_v21, %v626_v34  ;;  %v623_v45 = vsel %vm618_vm10, %v603_v27, %v615_v39  ;;  %v629_v46 = vsel %vm618_vm10, %v615_v39, %v603_v27 }
 0x1fd   : > { %991 = vmatpush1.bf16.msra.mxu0 %v1196_v6  ;;  %1018 = vmatpush1.bf16.msra.mxu1 %v1196_v6  ;;  %v998_v6 = vpack.c.bf16 %v655_v42, %v653_v43  ;;  %v657_v50 = vmul.f32 %v644_v20, %v623_v45  ;;  %v658_v51 = vmul.f32 %v648_v21, %v629_v46 }
 0x1fe   : > { %v994_v7 = vpack.c.bf16 %v651_v37, %v649_v26  ;;  %v605_v40 = vpop.permute.xlu1 %604  ;;  %v992_v41 = vpack.c.bf16 %v652_v38, %v650_v28 }
 0x200   : > { %993 = vmatprep.subr.bf16.mxu0 %v992_v41  ;;  %1010 = vmatprep.subr.bf16.mxu1 %v992_v41 }
 0x201   : > { %995 = vmatpush1.bf16.msra.mxu0 %v994_v7  ;;  %1019 = vmatpush1.bf16.msra.mxu1 %v994_v7 }
 0x202   : > { %v617_v47 = vpop.permute.xlu1 %616  ;;  %997 = vmatprep.subr.bf16.mxu0 %v996_v44  ;;  %1011 = vmatprep.subr.bf16.mxu1 %v996_v44 }
 0x203   : > { %v624_v48 = vsel %vm618_vm10, %v605_v40, %v617_v47  ;;  %v630_v49 = vsel %vm618_vm10, %v617_v47, %v605_v40 }
 0x204   : > { %v659_v52 = vmul.f32 %v644_v20, %v624_v48  ;;  %v660_v53 = vmul.f32 %v648_v21, %v630_v49 }
 0x205   : > { %999 = vmatpush1.bf16.msra.mxu0 %v998_v6  ;;  %1020 = vmatpush1.bf16.msra.mxu1 %v998_v6 }
 0x206   : > { %v1002_v54 = vpack.c.bf16 %v659_v52, %v657_v50  ;;  %v1000_v55 = vpack.c.bf16 %v660_v53, %v658_v51 }
 0x208   : > { %1001 = vmatprep.subr.bf16.mxu0 %v1000_v55  ;;  %1012 = vmatprep.subr.bf16.mxu1 %v1000_v55 }
 0x209   : > { %1003 = vmatpush1.bf16.msra.mxu0 %v1002_v54  ;;  %1021 = vmatpush1.bf16.msra.mxu1 %v1002_v54 }
 0x20c   : > { %819 = vmatmul.mubr.f32.vlgmr.msra.gmra.mrb[4].mxu0 %v673_v56  ;;  %825 = vmatmul.mubr.f32.vlgmr.msra.gmra.mrb[0].mxu1 %v675_v32  ;;  %v724_v0 = vpop.permute.xlu0 %723 }
 0x20d   : > { %962 = vmatprep.mubr.msk.f32.mxu1 %vm741_vm8, %v678_v57 }
 0x210   : > { %831 = vmatmul.mubr.f32.gmra.mrb[2].mxu1 %v677_v58  ;;  %v734_v15 = vpop.permute.xlu0 %733 }
 0x211   : > { %963 = vmatprep.mubr.msk.f32.mxu1 %vm741_vm8, %v680_v59 }
 0x213   : > { %v729_v62 = vpop.permute.xlu1 %728 }
 0x214   : > { %837 = vmatmul.mubr.f32.gmra.mrb[4].mxu1 %v679_v61 }
 0x217   : > { %v739_v24 = vpop.permute.xlu1 %738 }
 0x2df   : > { %v820_v1 = vpop.f32.mrb[4].mxu0  ;;  %v826_v2 = vpop.f32.mrb[0].mxu1 }
 0x2e0   : > { %v821_v3 = vadd.f32 %v820_v1, %v724_v0  ;;  %v827_v4 = vadd.f32 %v826_v2, %v729_v62  ;;  %v822_v5 = vpop.f32.mrb[5].mxu0  ;;  %v828_v8 = vpop.f32.mrb[1].mxu1 }
 0x2e1   : > { %v823_v9 = vadd.f32 %v822_v5, %v724_v0  ;;  %v829_v10 = vadd.f32 %v828_v8, %v729_v62 }
 0x2e2   : > { %vm843_vm11 = vcmp.ge.f32.partialorder %v821_v3, 0.0  ;;  %v851_v11 = vmul.f32 0.1, %v821_v3  ;;  %vm845_vm12 = vcmp.ge.f32.partialorder %v827_v4, 0.0  ;;  %v853_v12 = vmul.f32 0.1, %v827_v4 }
 0x2e3   : > { %vm844_vm13 = vcmp.ge.f32.partialorder %v823_v9, 0.0  ;;  %v852_v13 = vmul.f32 0.1, %v823_v9  ;;  %vm846_vm14 = vcmp.ge.f32.partialorder %v829_v10, 0.0  ;;  %v854_v14 = vmul.f32 0.1, %v829_v10 }
 0x2e4   : > { %v859_v16 = vsel %vm843_vm11, %v821_v3, %v851_v11  ;;  %v861_v17 = vsel %vm845_vm12, %v827_v4, %v853_v12  ;;  %v832_v18 = vpop.f32.mrb[2].mxu1 }
 0x2e5   : > { %867 = vst [vmem:[%s1117_s18] sm:$0xff] %v859_v16  ;;  %869 = vst [vmem:[%s1117_s18 + $0x10] sm:$0xff] %v861_v17  ;;  %v860_v29 = vsel %vm844_vm13, %v823_v9, %v852_v13  ;;  %v862_v20 = vsel %vm846_vm14, %v829_v10, %v854_v14  ;;  %v833_v21 = vadd.f32 %v832_v18, %v734_v15  ;;  %v834_v31 = vpop.f32.mrb[3].mxu1 }
 0x2e6   : > { %868 = vst [vmem:[%s1117_s18 + $0x8] sm:$0xff] %v860_v29  ;;  %870 = vst [vmem:[%s1117_s18 + $0x18] sm:$0xff] %v862_v20  ;;  %v835_v23 = vadd.f32 %v834_v31, %v734_v15 }
 0x2e7   : > { %vm847_vm15 = vcmp.ge.f32.partialorder %v833_v21, 0.0  ;;  %v855_v63 = vmul.f32 0.1, %v833_v21  ;;  %v838_v22 = vpop.f32.mrb[4].mxu1 }
 0x2e8   : > { %vm848_vm0 = vcmp.ge.f32.partialorder %v835_v23, 0.0  ;;  %v856_v27 = vmul.f32 0.1, %v835_v23  ;;  %v839_v60 = vadd.f32 %v838_v22, %v739_v24  ;;  %v840_v26 = vpop.f32.mrb[5].mxu1 }
 0x2e9   : > { %v863_v28 = vsel %vm847_vm15, %v833_v21, %v855_v63  ;;  %v841_v30 = vadd.f32 %v840_v26, %v739_v24 }
 0x2ea   : > { %871 = vst [vmem:[%s1117_s18 + $0x20] sm:$0xff] %v863_v28  ;;  %v864_v19 = vsel %vm848_vm0, %v835_v23, %v856_v27  ;;  %vm849_vm1 = vcmp.ge.f32.partialorder %v839_v60, 0.0  ;;  %v857_v25 = vmul.f32 0.1, %v839_v60 }
 0x2eb   : > { %872 = vst [vmem:[%s1117_s18 + $0x28] sm:$0xff] %v864_v19  ;;  %vm850_vm2 = vcmp.ge.f32.partialorder %v841_v30, 0.0  ;;  %v858_v33 = vmul.f32 0.1, %v841_v30 }
 0x2ec   : > { %v865_v34 = vsel %vm849_vm1, %v839_v60, %v857_v25 }
 0x2ed   : > { %873 = vst [vmem:[%s1117_s18 + $0x30] sm:$0xff] %v865_v34  ;;  %v866_v35 = vsel %vm850_vm2, %v841_v30, %v858_v33 }
 0x2ee   : > { %874 = vst [vmem:[%s1117_s18 + $0x38] sm:$0xff] %v866_v35 }
 0x2ef PF: > { %s17_s24 = sadd.s32 1, %s1046_s24  }
 0x2f0   : > { %p14_p4 = scmp.ge.s32.totalorder %s17_s24, 4  }
 0x2f2   :  { %16 = sbr.rel (!%p14_p4) target bundleno = 1 (0x1), region = 81 }

</bundles_post_ra>
